<compile_context>
chip_gen: v5e
topology: v5e:2x2
jax: 0.10.0
libtpu: 0.0.40
codegen_flags: <defaults>
</compile_context>

<pallas_src>
import functools

import jax
import jax.numpy as jnp
from jax.experimental import pallas as pl
from jax.experimental.pallas import tpu as pltpu

LANE = 128


def _round_up(n, m):
    return ((n + m - 1) // m) * m


def vae_mlp_kernel(x_ref, w1_ref, b1_ref, w2_ref, b2_ref, w3t_ref, b3_ref, qT_ref):
    # x:   (tb, d_in) f32     w1:  (d_in, hp) bf16   b1: (1, hp) f32
    # w2:  (hp, hp)   bf16    b2:  (1, hp)    f32
    # w3t: (ac, hp)   bf16    b3:  (ac, 1)    f32    qT: (ac, tb) f32
    x = x_ref[...].astype(jnp.bfloat16)

    h1 = jnp.dot(x, w1_ref[...], preferred_element_type=jnp.float32) + b1_ref[...]
    h1 = jnp.maximum(h1, 0.0)

    h2 = jnp.dot(h1.astype(jnp.bfloat16), w2_ref[...],
                 preferred_element_type=jnp.float32) + b2_ref[...]
    h2 = jnp.maximum(h2, 0.0)

    # q^T = w3^T @ h2^T: contract the hidden dim of both operands so the output
    # is (ac_dim, tb) -> batch lives on lanes (lane-dense, unmasked stores).
    qT = jax.lax.dot_general(
        w3t_ref[...], h2.astype(jnp.bfloat16),
        dimension_numbers=(((1,), (1,)), ((), ())),
        preferred_element_type=jnp.float32) + b3_ref[...]
    qT_ref[...] = qT.astype(qT_ref.dtype)


def prepare_params(params, *, weight_dtype=jnp.bfloat16):
    """Pad the hidden dim to a multiple of 128; weights bf16, biases f32.

    w1/w2 are stored as (in, out) (transposed vs. PyTorch nn.Linear); the last
    layer is stored as w3^T with shape (ac_dim, hidden) so the kernel can emit
    q^T with the batch on lanes. d_in and ac_dim are NOT padded.
    """
    w1, b1 = params["w1"], params["b1"]
    w2, b2 = params["w2"], params["b2"]
    w3, b3 = params["w3"], params["b3"]
    d_in, h = w1.shape
    ac = w3.shape[1]
    hp = _round_up(h, LANE)

    def pad2(w, rows, cols):
        return jnp.pad(w, ((0, rows - w.shape[0]), (0, cols - w.shape[1])))

    return {
        "w1": pad2(w1, d_in, hp).astype(weight_dtype),
        "b1": jnp.pad(b1, (0, hp - h)).reshape(1, hp).astype(jnp.float32),
        "w2": pad2(w2, hp, hp).astype(weight_dtype),
        "b2": jnp.pad(b2, (0, hp - h)).reshape(1, hp).astype(jnp.float32),
        "w3t": pad2(w3.T, ac, hp).astype(weight_dtype),
        "b3": b3.reshape(ac, 1).astype(jnp.float32),
    }


def _choose_batch_tiling(B, block_b):
    """Pick (tb, nb, bp) with tb * nb == bp >= B.

    * B <= 128: a single full-array block, no padding at all.
    * Otherwise tb is a multiple of 128 (lane-dense q^T stores), grown toward
      block_b, while keeping >= 2 tiles so the 'parallel' grid axis can shard
      across the two TensorCores on v7x (harmless ~0.35us on v5e/v6e).
    """
    if B <= LANE:
        return B, 1, B
    bp = _round_up(B, LANE)
    n128 = bp // LANE
    max_d = max(1, block_b // LANE)
    if n128 >= 2:
        max_d = min(max_d, n128 // 2)
    d = max(i for i in range(1, max_d + 1) if n128 % i == 0)
    tb = LANE * d
    return tb, n128 // d, bp


@functools.partial(jax.jit, static_argnames=("block_b",))
def vae_forward(obs_with_id, prep, *, block_b=512):
    """Fused forward pass of the VAE MLP: returns (B, ac_dim) f32."""
    w1, b1 = prep["w1"], prep["b1"]
    w2, b2 = prep["w2"], prep["b2"]
    w3t, b3 = prep["w3t"], prep["b3"]

    B, d_in = obs_with_id.shape
    hp = w1.shape[1]
    ac = w3t.shape[0]

    tb, nb, bp = _choose_batch_tiling(B, block_b)

    x = obs_with_id
    if bp != B:  # only a ragged batch tail ever gets padded
        x = jnp.pad(x, ((0, bp - B), (0, 0)))

    flops = 2 * bp * (d_in * hp + hp * hp + hp * ac)
    bytes_accessed = (
        bp * d_in * 4                           # x in (f32, unpadded lanes)
        + (w1.size + w2.size + w3t.size) * 2    # bf16 weights
        + (b1.size + b2.size + b3.size) * 4     # f32 biases
        + ac * bp * 4                           # q^T out (f32, unpadded)
    )

    resident = lambda shape: pl.BlockSpec(shape, lambda i: (0, 0))

    qT = pl.pallas_call(
        vae_mlp_kernel,
        out_shape=jax.ShapeDtypeStruct((ac, bp), jnp.float32),
        grid=(nb,),
        in_specs=[
            pl.BlockSpec((tb, d_in), lambda i: (i, 0)),   # x: tiled over batch
            resident((d_in, hp)), resident((1, hp)),      # w1, b1 (VMEM-resident)
            resident((hp, hp)), resident((1, hp)),        # w2, b2
            resident((ac, hp)), resident((ac, 1)),        # w3^T, b3
        ],
        out_specs=pl.BlockSpec((ac, tb), lambda i: (0, i)),
        compiler_params=pltpu.CompilerParams(
            dimension_semantics=("parallel",)),
        cost_estimate=pl.CostEstimate(
            flops=flops, transcendentals=0, bytes_accessed=bytes_accessed),
    )(x, w1, b1, w2, b2, w3t, b3)

    return qT[:, :B].T


def init_params(key, ob_dim, ac_dim, n_agents, h_dim):
    """Init mimicking nn.Linear (weights stored as (in, out))."""
    d_in = ob_dim + n_agents
    k1, k2, k3, k4, k5, k6 = jax.random.split(key, 6)

    def lin_init(kw, kb, fan_in, fan_out):
        bound = 1.0 / jnp.sqrt(fan_in)
        w = jax.random.uniform(kw, (fan_in, fan_out), jnp.float32, -bound, bound)
        b = jax.random.uniform(kb, (fan_out,), jnp.float32, -bound, bound)
        return w, b

    w1, b1 = lin_init(k1, k2, d_in, h_dim)
    w2, b2 = lin_init(k3, k4, h_dim, h_dim)
    w3, b3 = lin_init(k5, k6, h_dim, ac_dim)
    return {"w1": w1, "b1": b1, "w2": w2, "b2": b2, "w3": w3, "b3": b3}


def vae_ref(obs_with_id, p):
    x = jnp.maximum(obs_with_id @ p["w1"] + p["b1"], 0.0)
    h = jnp.maximum(x @ p["w2"] + p["b2"], 0.0)
    return h @ p["w3"] + p["b3"]


if __name__ == "__main__":
    # Shapes consistent with the module (h_dim=256 is the module default);
    # batch=256 exercises the 2-tile batch grid (tb=128, nb=2) with no padding.
    ob_dim, ac_dim, n_agents, h_dim = 12, 8, 4, 256
    batch = 256

    key = jax.random.PRNGKey(0)
    k_params, k_obs = jax.random.split(key)

    params = init_params(k_params, ob_dim, ac_dim, n_agents, h_dim)
    obs_with_id = jax.random.normal(k_obs, (batch, ob_dim + n_agents), jnp.float32)

    prep = prepare_params(params)
    q = vae_forward(obs_with_id, prep)
    q = jax.block_until_ready(q)

    q_ref = vae_ref(obs_with_id, params)
    assert q.shape == (batch, ac_dim), q.shape
    max_err = float(jnp.max(jnp.abs(q - q_ref)))
    # bf16 weights/activations with f32 accumulation: expect ~1e-2 abs error.
    assert jnp.allclose(q, q_ref, atol=3e-2, rtol=3e-2), (
        f"mismatch vs ref (max abs err {max_err})")

    print("KERNEL_OK")
</pallas_src>

<mosaic_0001>
module attributes {stable_mosaic.version = 11 : i64} {
  func.func @vae_mlp_kernel(%arg0: i32, %arg1: memref<128x16xf32, #tpu.memory_space<vmem>>, %arg2: memref<16x256xbf16, #tpu.memory_space<vmem>>, %arg3: memref<1x256xf32, #tpu.memory_space<vmem>>, %arg4: memref<256x256xbf16, #tpu.memory_space<vmem>>, %arg5: memref<1x256xf32, #tpu.memory_space<vmem>>, %arg6: memref<8x256xbf16, #tpu.memory_space<vmem>>, %arg7: memref<8x1xf32, #tpu.memory_space<vmem>>, %arg8: memref<8x128xf32, #tpu.memory_space<vmem>>) attributes {dimension_semantics = [#tpu.dimension_semantics<parallel>], iteration_bounds = array<i64: 2>, scalar_prefetch = 0 : i64, scratch_operands = 0 : i64, tpu.core_type = #tpu.core_type<tc>, window_params = [{transform_indices = @transform_0, window_bounds = array<i64: 128, 16>}, {pipeline_mode = #tpu.pipeline_mode<synchronous>, transform_indices = @transform_1, window_bounds = array<i64: 16, 256>}, {pipeline_mode = #tpu.pipeline_mode<synchronous>, transform_indices = @transform_2, window_bounds = array<i64: 1, 256>}, {pipeline_mode = #tpu.pipeline_mode<synchronous>, transform_indices = @transform_3, window_bounds = array<i64: 256, 256>}, {pipeline_mode = #tpu.pipeline_mode<synchronous>, transform_indices = @transform_4, window_bounds = array<i64: 1, 256>}, {pipeline_mode = #tpu.pipeline_mode<synchronous>, transform_indices = @transform_5, window_bounds = array<i64: 8, 256>}, {pipeline_mode = #tpu.pipeline_mode<synchronous>, transform_indices = @transform_6, window_bounds = array<i64: 8, 1>}, {transform_indices = @transform_7, window_bounds = array<i64: 8, 128>}]} {
    %c0 = arith.constant 0 : index
    %c0_0 = arith.constant 0 : index
    %0 = vector.load %arg1[%c0, %c0_0] : memref<128x16xf32, #tpu.memory_space<vmem>>, vector<128x16xf32>
    %1 = arith.truncf %0 : vector<128x16xf32> to vector<128x16xbf16>
    %c0_1 = arith.constant 0 : index
    %c0_2 = arith.constant 0 : index
    %2 = vector.load %arg2[%c0_1, %c0_2] : memref<16x256xbf16, #tpu.memory_space<vmem>>, vector<16x256xbf16>
    %cst = arith.constant dense<0.000000e+00> : vector<128x256xf32>
    %3 = tpu.matmul %1, %2, %cst {dimension_numbers = #tpu.dot_dimension_numbers<[1], [0], [0], [1], [0, 0, 1, 1], [], []>} : vector<128x16xbf16>, vector<16x256xbf16>, vector<128x256xf32> -> vector<128x256xf32>
    %c0_3 = arith.constant 0 : index
    %c0_4 = arith.constant 0 : index
    %4 = vector.load %arg3[%c0_3, %c0_4] : memref<1x256xf32, #tpu.memory_space<vmem>>, vector<1x256xf32>
    %5 = vector.broadcast %4 : vector<1x256xf32> to vector<128x256xf32>
    %6 = arith.addf %3, %5 : vector<128x256xf32>
    %cst_5 = arith.constant 0.000000e+00 : f32
    %7 = vector.broadcast %cst_5 : f32 to vector<128x256xf32>
    %8 = arith.maximumf %6, %7 : vector<128x256xf32>
    %9 = arith.truncf %8 : vector<128x256xf32> to vector<128x256xbf16>
    %c0_6 = arith.constant 0 : index
    %c0_7 = arith.constant 0 : index
    %10 = vector.load %arg4[%c0_6, %c0_7] : memref<256x256xbf16, #tpu.memory_space<vmem>>, vector<256x256xbf16>
    %cst_8 = arith.constant dense<0.000000e+00> : vector<128x256xf32>
    %11 = tpu.matmul %9, %10, %cst_8 {dimension_numbers = #tpu.dot_dimension_numbers<[1], [0], [0], [1], [0, 0, 1, 1], [], []>} : vector<128x256xbf16>, vector<256x256xbf16>, vector<128x256xf32> -> vector<128x256xf32>
    %c0_9 = arith.constant 0 : index
    %c0_10 = arith.constant 0 : index
    %12 = vector.load %arg5[%c0_9, %c0_10] : memref<1x256xf32, #tpu.memory_space<vmem>>, vector<1x256xf32>
    %13 = vector.broadcast %12 : vector<1x256xf32> to vector<128x256xf32>
    %14 = arith.addf %11, %13 : vector<128x256xf32>
    %cst_11 = arith.constant 0.000000e+00 : f32
    %15 = vector.broadcast %cst_11 : f32 to vector<128x256xf32>
    %16 = arith.maximumf %14, %15 : vector<128x256xf32>
    %c0_12 = arith.constant 0 : index
    %c0_13 = arith.constant 0 : index
    %17 = vector.load %arg6[%c0_12, %c0_13] : memref<8x256xbf16, #tpu.memory_space<vmem>>, vector<8x256xbf16>
    %18 = arith.truncf %16 : vector<128x256xf32> to vector<128x256xbf16>
    %cst_14 = arith.constant dense<0.000000e+00> : vector<8x128xf32>
    %19 = tpu.matmul %17, %18, %cst_14 {dimension_numbers = #tpu.dot_dimension_numbers<[1], [1], [0], [0], [0, 0, 1, 0], [], []>} : vector<8x256xbf16>, vector<128x256xbf16>, vector<8x128xf32> -> vector<8x128xf32>
    %c0_15 = arith.constant 0 : index
    %c0_16 = arith.constant 0 : index
    %20 = vector.load %arg7[%c0_15, %c0_16] : memref<8x1xf32, #tpu.memory_space<vmem>>, vector<8x1xf32>
    %21 = vector.broadcast %20 : vector<8x1xf32> to vector<8x128xf32>
    %22 = arith.addf %19, %21 : vector<8x128xf32>
    %c0_17 = arith.constant 0 : index
    %c0_18 = arith.constant 0 : index
    %23 = vector.load %arg8[%c0_17, %c0_18] : memref<8x128xf32, #tpu.memory_space<vmem>>, vector<8x128xf32>
    tpu.vector_store %arg8[%c0_17, %c0_18], %22 {strides = array<i32>} : memref<8x128xf32, #tpu.memory_space<vmem>>, vector<8x128xf32>,
    return
  }
  func.func @transform_0(%arg0: i32) -> (i32, i32) {
    %c0_i32 = arith.constant 0 : i32
    %c0_i32_0 = arith.constant 0 : i32
    return %arg0, %c0_i32 : i32, i32
  }
  func.func @transform_1(%arg0: i32) -> (i32, i32) {
    %c0_i32 = arith.constant 0 : i32
    %c0_i32_0 = arith.constant 0 : i32
    %c0_i32_1 = arith.constant 0 : i32
    return %c0_i32, %c0_i32_0 : i32, i32
  }
  func.func @transform_2(%arg0: i32) -> (i32, i32) {
    %c0_i32 = arith.constant 0 : i32
    %c0_i32_0 = arith.constant 0 : i32
    %c0_i32_1 = arith.constant 0 : i32
    return %c0_i32, %c0_i32_0 : i32, i32
  }
  func.func @transform_3(%arg0: i32) -> (i32, i32) {
    %c0_i32 = arith.constant 0 : i32
    %c0_i32_0 = arith.constant 0 : i32
    %c0_i32_1 = arith.constant 0 : i32
    return %c0_i32, %c0_i32_0 : i32, i32
  }
  func.func @transform_4(%arg0: i32) -> (i32, i32) {
    %c0_i32 = arith.constant 0 : i32
    %c0_i32_0 = arith.constant 0 : i32
    %c0_i32_1 = arith.constant 0 : i32
    return %c0_i32, %c0_i32_0 : i32, i32
  }
  func.func @transform_5(%arg0: i32) -> (i32, i32) {
    %c0_i32 = arith.constant 0 : i32
    %c0_i32_0 = arith.constant 0 : i32
    %c0_i32_1 = arith.constant 0 : i32
    return %c0_i32, %c0_i32_0 : i32, i32
  }
  func.func @transform_6(%arg0: i32) -> (i32, i32) {
    %c0_i32 = arith.constant 0 : i32
    %c0_i32_0 = arith.constant 0 : i32
    %c0_i32_1 = arith.constant 0 : i32
    return %c0_i32, %c0_i32_0 : i32, i32
  }
  func.func @transform_7(%arg0: i32) -> (i32, i32) {
    %c0_i32 = arith.constant 0 : i32
    %c0_i32_0 = arith.constant 0 : i32
    return %c0_i32, %arg0 : i32, i32
  }
}

</mosaic_0001>

<bundles_post_ra>
// kernel: vae_forward.1
= control target key start
LH: loop header
LB: loop body
LE: loop exit
PB: predicated region body
PF: predicated region fallthrough
CT: control target
= control target key end

     0   :  { %12 = vsyncpa [#allocation3], 0  ;;  %s1832_s0 = inlined_call_operand.vmem [shape: f32[256,16], index: 0, kind: input, shape index: {}]   ;;  %s1833_s1 = inlined_call_operand.vmem [shape: bf16[16,256], index: 1, kind: input, shape index: {}]   ;;  %s1834_s2 = inlined_call_operand.vmem [shape: f32[1,256], index: 2, kind: input, shape index: {}]   ;;  %s1835_s3 = inlined_call_operand.vmem [shape: bf16[256,256], index: 3, kind: input, shape index: {}]   ;;  %s1836_s4 = inlined_call_operand.vmem [shape: f32[1,256], index: 4, kind: input, shape index: {}]   ;;  %s1837_s5 = inlined_call_operand.vmem [shape: bf16[8,256], index: 5, kind: input, shape index: {}]   ;;  %s1838_s6 = inlined_call_operand.vmem [shape: f32[8,1], index: 6, kind: input, shape index: {}]   ;;  %s1839_s7 = inlined_call_operand.hbm [shape: f32[8,256], index: 7, kind: output, shape index: {}]  }
   0x1   :  { %14 = vsyncpa [#allocation3 + $0x1], 0  ;;  %s1396_s24 = smov 0   ;;  %s1398_s25 = smov 0  }
   0x2   :  { %s1400_s26 = smov 0   ;;  %s1402_s27 = smov 0  }
   0x3 LB: > { %s1417_s28 = sadd.s32 4294967295, %s1353_s27   ;;  %s1051_s29 = sadd.s32 4294967294, %s1353_s27   ;;  %s1353_s27 = sphi %s1402_s27, %s1845_s27   ;;  %s1349_s26 = sphi %s1400_s26, %s1844_s26   ;;  %s1345_s25 = sphi %s1398_s25, %s1843_s25   ;;  %s1341_s24 = sphi %s1396_s24, %s1842_s24  }
   0x4   : > { %s1421_s30 = sadd.s32 1, %s1353_s27   ;;  %s179_s8 = sadd.s32 1, %s1349_s26 }
   0x5   : > { %s176_s9 = ssub.s32 %s1353_s27, %s1421_s30  ;;  %p189_p0 = scmp.ne.s32.totalorder %s1349_s26, %s1345_s25 }
   0x6   : > { %p177_p1 = scmp.eq.s32.totalorder %s176_s9, 0  ;;  %p190_p2 = scmp.eq.s32.totalorder %s1417_s28, 1 }
   0x7   : > { %p195_p3 = scmp.ne.s32.totalorder %s1345_s25, %s1341_s24  ;;  %p196_p4 = scmp.eq.s32.totalorder %s1051_s29, 1 }
   0x8   : > { %s1432_s10 = scalar_select %p177_p1, %s1349_s26, %s179_s8  }
   0x9   : > { %p1434_p5 = por %p190_p2, %p189_p0  ;;  %p1438_p6 = por %p196_p4, %p195_p3 }
   0xa   : > { %p1054_p7 = scmp.ge.s32.totalorder %s1353_s27, 1  ;;  %p241_p8 = scmp.lt.s32.totalorder %s1353_s27, 3 }
   0xc   : > { %p242_p9 = pnand %p1054_p7, %p241_p8 }
   0xd   : > { %s1056_s21 = sshll.u32 (!%p242_p9), %s1417_s28, 4  ;;  %s270_s13 = sand.u32 (!%p242_p9), 1, %s1345_s25  }
   0xe   : > { %245 = sbr.rel (%p242_p9) target bundleno = 629 (0x275), region = 48  ;;  %p274_p10 = scmp.lt.s32.totalorder (!%p242_p9), %s1056_s21, 31 }
   0xf   : > { %s1055_s14 = sshll.u32 (!%p242_p9), %s270_s13, 3  ;;  %s1211_s15 = sshll.u32 (!%p242_p9), %s1417_s28, 3 }
  0x10   : > { %s987_s17 = scalar_lea.hbm (!%p242_p9), %s1839_s7, %s1211_s15  ;;  %s272_s18 = scalar_lea.vmem (!%p242_p9), [#allocation2], %s1055_s14 }
  0x11   : > { %s989_s19 = sshll.u32 (!%p242_p9), %s272_s18, 4  ;;  %s991_s20 = sshll.u32 (!%p242_p9), %s987_s17, 4  ;;  %s990_s19 = int_to_ptr.vmem [resolvable:$true] %s989_s19  ;;  %s992_s20 = int_to_ptr.hbm [resolvable:$true] %s991_s20 }
  0x12   : > { %s1311_s9 = scalar_lea.hbm (!%p242_p9), %s1839_s7, 16 }
  0x13   : > { %v1060_v0 = vld [vmem:[%s1833_s1] sm:$0xf]  ;;  %v1215_v1 = vld [vmem:[%s1833_s1 + $0x4] sm:$0xf0]  ;;  %v1214_v2 = vld [vmem:[%s1833_s1 + $0x4] sm:$0xf] }
  0x14   : > { %v1061_v3 = vor.u32 %v1215_v1, %v1060_v0  ;;  %v1062_v4 = vld [vmem:[%s1833_s1 + $0x8] sm:$0xf0]  ;;  %s1847_s21 = smov (!%p274_p10, %s1056_s21), 31  ;;  %vm322_vm0 = vcmask 130048   ;;  %v1140_v18 = vld [vmem:[%s1835_s3 + $0x70] sm:$0xf] }
  0x15   : > { %v1065_v5 = vor.u32 %v1214_v2, %v1062_v4  ;;  %s1057_s22 = sshll.u32 %s1847_s21, 3  ;;  %v1231_v19 = vld [vmem:[%s1835_s3 + $0x74] sm:$0xf0]  ;;  %v1204_v20 = vld [vmem:[%s1835_s3 + $0xf0] sm:$0xf]  ;;  %s977_s21 = scalar_lea.sflag [#allocation3], %s270_s13 }
  0x16   : > { %354 = vmatpush.bf16.msra.mxu0 %v1061_v3  ;;  %1248 = vmatpush.bf16.msra.mxu2 %v1061_v3  ;;  %s1460_s8 = scalar_lea.vmem %s1832_s0, %s1057_s22  ;;  %v1141_v21 = vor.u32 %v1231_v19, %v1140_v18  ;;  %v1247_v22 = vld [vmem:[%s1835_s3 + $0xf4] sm:$0xf0]  ;;  %v1230_v23 = vld [vmem:[%s1835_s3 + $0x74] sm:$0xf]  ;;  %v1142_v24 = vld [vmem:[%s1835_s3 + $0x78] sm:$0xf0] }
  0x17   : > { %403 = vmatpush.bf16.msra.mxu1 %v1065_v5  ;;  %1249 = vmatpush.bf16.msra.mxu3 %v1065_v5  ;;  %v280_v6 = vld [vmem:[%s1460_s8] sm:$0xff]  ;;  %v281_v7 = vld [vmem:[%s1460_s8 + $0x8] sm:$0xff]  ;;  %v282_v9 = vld [vmem:[%s1460_s8 + $0x10] sm:$0xff]  ;;  %v1205_v25 = vor.u32 %v1247_v22, %v1204_v20  ;;  %v1145_v26 = vor.u32 %v1230_v23, %v1142_v24  ;;  %s1305_s22 = sshra.s32 %s992_s20, 4  ;;  %s1306_s22 = int_to_ptr.hbm [resolvable:$true] %s1305_s22 }
  0x18   : > { %v296_v8 = vpack.c.bf16 %v281_v7, %v280_v6  ;;  %v283_v10 = vld [vmem:[%s1460_s8 + $0x18] sm:$0xff]  ;;  %v284_v12 = vld [vmem:[%s1460_s8 + $0x20] sm:$0xff]  ;;  %v285_v13 = vld [vmem:[%s1460_s8 + $0x28] sm:$0xff]  ;;  %s1307_s28 = scalar_lea.hbm %s1306_s22, 8  ;;  %p1312_p0 = scmp.lt.s32.totalorder %s1306_s22, %s1839_s7 }
  0x19   : > { %v297_v11 = vpack.c.bf16 %v283_v10, %v282_v9  ;;  %v298_v14 = vpack.c.bf16 %v285_v13, %v284_v12  ;;  %v290_v15 = vld [vmem:[%s1460_s8 + $0x50] sm:$0xff]  ;;  %v291_v16 = vld [vmem:[%s1460_s8 + $0x58] sm:$0xff]  ;;  %v1132_v29 = vld [vmem:[%s1835_s3 + $0x60] sm:$0xf]  ;;  %p1308_p11 = scmp.ne.s32.totalorder %s1306_s22, %s1307_s28  ;;  %p1313_p1 = scmp.lt.s32.totalorder %s1311_s9, %s1307_s28 }
  0x1a   : > { %1066 = vmatmul.msk.bf16.vlgmr.msra.gmra.mxu0 %vm322_vm0, %v296_v8  ;;  %1074 = vmatmul.msk.bf16.vlgmr.msra.gmra.mxu1 %vm322_vm0, %v296_v8  ;;  %v301_v17 = vpack.c.bf16 %v291_v16, %v290_v15  ;;  %v1246_v27 = vld [vmem:[%s1835_s3 + $0xf4] sm:$0xf]  ;;  %v1206_v28 = vld [vmem:[%s1835_s3 + $0xf8] sm:$0xf0]  ;;  %v1229_v31 = vld [vmem:[%s1835_s3 + $0x64] sm:$0xf0] }
  0x1b   : > { %691 = vmatpush.bf16.msrb.mxu2 %v1141_v21  ;;  %v1209_v30 = vor.u32 %v1246_v27, %v1206_v28  ;;  %v1196_v32 = vld [vmem:[%s1835_s3 + $0xe0] sm:$0xf]  ;;  %v1245_v33 = vld [vmem:[%s1835_s3 + $0xe4] sm:$0xf0]  ;;  %740 = vmatpush.bf16.msrb.mxu3 %v1205_v25  ;;  %v1133_v34 = vor.u32 %v1229_v31, %v1132_v29  ;;  %v1228_v36 = vld [vmem:[%s1835_s3 + $0x64] sm:$0xf]  ;;  %p1309_p12 = pnand %p1308_p11, %p1434_p5  ;;  %p1314_p2 = por %p1313_p1, %p1312_p0 }
  0x1c   : > { %1071 = vmatmul.msk.bf16.vlgmr.msra.gmra.mxu2 %vm322_vm0, %v301_v17  ;;  %1079 = vmatmul.msk.bf16.vlgmr.msra.gmra.mxu3 %vm322_vm0, %v301_v17  ;;  %v1197_v35 = vor.u32 %v1245_v33, %v1196_v32  ;;  %v1134_v37 = vld [vmem:[%s1835_s3 + $0x68] sm:$0xf0]  ;;  %v1244_v38 = vld [vmem:[%s1835_s3 + $0xe4] sm:$0xf]  ;;  %v286_v39 = vld [vmem:[%s1460_s8 + $0x30] sm:$0xff] }
  0x1d   : > { %789 = vmatpush.bf16.msrb.mxu0 %v1145_v26  ;;  %v287_v40 = vld [vmem:[%s1460_s8 + $0x38] sm:$0xff]  ;;  %838 = vmatpush.bf16.msrb.mxu1 %v1209_v30  ;;  %v1137_v41 = vor.u32 %v1228_v36, %v1134_v37  ;;  %v1198_v42 = vld [vmem:[%s1835_s3 + $0xe8] sm:$0xf0]  ;;  %v1124_v43 = vld [vmem:[%s1835_s3 + $0x50] sm:$0xf]  ;;  %p1310_p13 = pneg %p1309_p12 }
  0x1e   : > { %v1227_v44 = vld [vmem:[%s1835_s3 + $0x54] sm:$0xf0]  ;;  %v1201_v45 = vor.u32 %v1244_v38, %v1198_v42  ;;  %v1188_v46 = vld [vmem:[%s1835_s3 + $0xd0] sm:$0xf]  ;;  %v1226_v48 = vld [vmem:[%s1835_s3 + $0x54] sm:$0xf]  ;;  %v299_v61 = vpack.c.bf16 %v287_v40, %v286_v39 }
  0x1f   : > { %v1243_v47 = vld [vmem:[%s1835_s3 + $0xd4] sm:$0xf0]  ;;  %692 = vmatpush.bf16.msrb.mxu2 %v1133_v34  ;;  %v1125_v49 = vor.u32 %v1227_v44, %v1124_v43  ;;  %v1126_v50 = vld [vmem:[%s1835_s3 + $0x58] sm:$0xf0]  ;;  %v1242_v51 = vld [vmem:[%s1835_s3 + $0xd4] sm:$0xf]  ;;  %741 = vmatpush.bf16.msrb.mxu3 %v1197_v35  ;;  %p1315_p3 = pnand %p1314_p2, %p1310_p13 }
  0x20   : > { %v1190_v52 = vld [vmem:[%s1835_s3 + $0xd8] sm:$0xf0]  ;;  %v1189_v53 = vor.u32 %v1243_v47, %v1188_v46  ;;  %v1129_v54 = vor.u32 %v1226_v48, %v1126_v50  ;;  %v1116_v55 = vld [vmem:[%s1835_s3 + $0x40] sm:$0xf]  ;;  %v1225_v56 = vld [vmem:[%s1835_s3 + $0x44] sm:$0xf0] }
  0x21   : > { %790 = vmatpush.bf16.msrb.mxu0 %v1137_v41  ;;  %v292_v57 = vld [vmem:[%s1460_s8 + $0x60] sm:$0xff]  ;;  %v293_v58 = vld [vmem:[%s1460_s8 + $0x68] sm:$0xff]  ;;  %839 = vmatpush.bf16.msrb.mxu1 %v1201_v45  ;;  %v1193_v59 = vor.u32 %v1242_v51, %v1190_v52  ;;  %v1117_v1 = vor.u32 %v1225_v56, %v1116_v55  ;;  %v294_v10 = vld [vmem:[%s1460_s8 + $0x70] sm:$0xff] }
  0x22   : > { %v1180_v60 = vld [vmem:[%s1835_s3 + $0xc0] sm:$0xf]  ;;  %v1241_v62 = vld [vmem:[%s1835_s3 + $0xc4] sm:$0xf0]  ;;  %v1224_v63 = vld [vmem:[%s1835_s3 + $0x44] sm:$0xf]  ;;  %v302_v4 = vpack.c.bf16 %v293_v58, %v292_v57 }
  0x23   : > { %v1118_v0 = vld [vmem:[%s1835_s3 + $0x48] sm:$0xf0]  ;;  %693 = vmatpush.bf16.msrb.mxu2 %v1125_v49  ;;  %v1240_v2 = vld [vmem:[%s1835_s3 + $0xc4] sm:$0xf]  ;;  %742 = vmatpush.bf16.msrb.mxu3 %v1189_v53  ;;  %v1181_v5 = vor.u32 %v1241_v62, %v1180_v60  ;;  %v1223_v15 = vld [vmem:[%s1835_s3 + $0x34] sm:$0xf0] }
  0x24   : > { %v1182_v3 = vld [vmem:[%s1835_s3 + $0xc8] sm:$0xf0]  ;;  %v1121_v6 = vor.u32 %v1224_v63, %v1118_v0  ;;  %v288_v8 = vld [vmem:[%s1460_s8 + $0x40] sm:$0xff]  ;;  %v1172_v16 = vld [vmem:[%s1835_s3 + $0xb0] sm:$0xf] }
  0x25   : > { %791 = vmatpush.bf16.msrb.mxu0 %v1129_v54  ;;  %840 = vmatpush.bf16.msrb.mxu1 %v1193_v59  ;;  %v1185_v7 = vor.u32 %v1240_v2, %v1182_v3  ;;  %v289_v9 = vld [vmem:[%s1460_s8 + $0x48] sm:$0xff]  ;;  %v1239_v18 = vld [vmem:[%s1835_s3 + $0xb4] sm:$0xf0]  ;;  %v1222_v19 = vld [vmem:[%s1835_s3 + $0x34] sm:$0xf] }
  0x26   : > { %v300_v12 = vpack.c.bf16 %v289_v9, %v288_v8  ;;  %v1110_v20 = vld [vmem:[%s1835_s3 + $0x38] sm:$0xf0]  ;;  %v1173_v21 = vor.u32 %v1239_v18, %v1172_v16  ;;  %v1238_v23 = vld [vmem:[%s1835_s3 + $0xb4] sm:$0xf]  ;;  %v1100_v26 = vld [vmem:[%s1835_s3 + $0x20] sm:$0xf] }
  0x27   : > { %694 = vmatpush.bf16.msrb.mxu2 %v1117_v1  ;;  %743 = vmatpush.bf16.msrb.mxu3 %v1181_v5  ;;  %v1113_v22 = vor.u32 %v1222_v19, %v1110_v20  ;;  %v1174_v24 = vld [vmem:[%s1835_s3 + $0xb8] sm:$0xf0]  ;;  %v1221_v27 = vld [vmem:[%s1835_s3 + $0x24] sm:$0xf0]  ;;  %v1164_v29 = vld [vmem:[%s1835_s3 + $0xa0] sm:$0xf] }
  0x28   : > { %v1177_v25 = vor.u32 %v1238_v23, %v1174_v24  ;;  %v1101_v28 = vor.u32 %v1221_v27, %v1100_v26  ;;  %v1237_v30 = vld [vmem:[%s1835_s3 + $0xa4] sm:$0xf0]  ;;  %v1220_v31 = vld [vmem:[%s1835_s3 + $0x24] sm:$0xf]  ;;  %v1102_v33 = vld [vmem:[%s1835_s3 + $0x28] sm:$0xf0] }
  0x29   : > { %792 = vmatpush.bf16.msrb.mxu0 %v1121_v6  ;;  %841 = vmatpush.bf16.msrb.mxu1 %v1185_v7  ;;  %v1165_v32 = vor.u32 %v1237_v30, %v1164_v29  ;;  %v1236_v34 = vld [vmem:[%s1835_s3 + $0xa4] sm:$0xf]  ;;  %v1166_v35 = vld [vmem:[%s1835_s3 + $0xa8] sm:$0xf0]  ;;  %v1105_v36 = vor.u32 %v1220_v31, %v1102_v33  ;;  %v1092_v38 = vld [vmem:[%s1835_s3 + $0x10] sm:$0xf] }
  0x2a   : > { %1067 = vmatmul.msk.bf16.gmra.mxu0 %vm322_vm0, %v297_v11  ;;  %1075 = vmatmul.msk.bf16.gmra.mxu1 %vm322_vm0, %v297_v11  ;;  %v295_v11 = vld [vmem:[%s1460_s8 + $0x78] sm:$0xff]  ;;  %v1169_v37 = vor.u32 %v1236_v34, %v1166_v35  ;;  %v1156_v40 = vld [vmem:[%s1835_s3 + $0x90] sm:$0xf]  ;;  %v1218_v43 = vld [vmem:[%s1835_s3 + $0x14] sm:$0xf] }
  0x2b   : > { %v303_v13 = vpack.c.bf16 %v295_v11, %v294_v10  ;;  %744 = vmatpush.bf16.msrb.mxu3 %v1173_v21  ;;  %v1219_v39 = vld [vmem:[%s1835_s3 + $0x14] sm:$0xf0]  ;;  %v1094_v44 = vld [vmem:[%s1835_s3 + $0x18] sm:$0xf0]  ;;  %v1234_v47 = vld [vmem:[%s1835_s3 + $0x94] sm:$0xf] }
  0x2c   : > { %1072 = vmatmul.msk.bf16.gmra.mxu2 %vm322_vm0, %v302_v4  ;;  %1080 = vmatmul.msk.bf16.gmra.mxu3 %vm322_vm0, %v302_v4  ;;  %v1093_v41 = vor.u32 %v1219_v39, %v1092_v38  ;;  %v1235_v42 = vld [vmem:[%s1835_s3 + $0x94] sm:$0xf0]  ;;  %v1097_v46 = vor.u32 %v1218_v43, %v1094_v44  ;;  %v1158_v48 = vld [vmem:[%s1835_s3 + $0x98] sm:$0xf0]  ;;  %v1084_v50 = vld [vmem:[%s1835_s3] sm:$0xf] }
  0x2d   : > { %793 = vmatpush.bf16.msrb.mxu0 %v1113_v22  ;;  %842 = vmatpush.bf16.msrb.mxu1 %v1177_v25  ;;  %v1157_v45 = vor.u32 %v1235_v42, %v1156_v40  ;;  %v1161_v49 = vor.u32 %v1234_v47, %v1158_v48  ;;  %v1217_v51 = vld [vmem:[%s1835_s3 + $0x4] sm:$0xf0]  ;;  %v1148_v52 = vld [vmem:[%s1835_s3 + $0x80] sm:$0xf]  ;;  %v1216_v55 = vld [vmem:[%s1835_s3 + $0x4] sm:$0xf] }
  0x2e   : > { %v1085_v53 = vor.u32 %v1217_v51, %v1084_v50  ;;  %v1233_v54 = vld [vmem:[%s1835_s3 + $0x84] sm:$0xf0]  ;;  %v1086_v56 = vld [vmem:[%s1835_s3 + $0x8] sm:$0xf0]  ;;  %v1232_v59 = vld [vmem:[%s1835_s3 + $0x84] sm:$0xf] }
  0x2f   : > { %745 = vmatpush.bf16.msrb.mxu3 %v1165_v32  ;;  %v1149_v57 = vor.u32 %v1233_v54, %v1148_v52  ;;  %v1089_v58 = vor.u32 %v1216_v55, %v1086_v56  ;;  %v1150_v60 = vld [vmem:[%s1835_s3 + $0x88] sm:$0xf0]  ;;  %v306_v62 = vld [vmem:[%s1834_s2] sm:$0x3] }
  0x30   : > { %v1689_v1 = vperm.slane %v306_v62, 0  ;;  %v1691_v2 = vperm.slane %v306_v62, 1 }
  0x31   : > { %794 = vmatpush.bf16.msrb.mxu0 %v1105_v36  ;;  %843 = vmatpush.bf16.msrb.mxu1 %v1169_v37 }
  0x33   : > { %746 = vmatpush.bf16.msrb.mxu3 %v1157_v45 }
  0x35   : > { %795 = vmatpush.bf16.msrb.mxu0 %v1097_v46  ;;  %844 = vmatpush.bf16.msrb.mxu1 %v1161_v49 }
  0x37   : > { %747 = vmatpush.bf16.msrb.mxu3 %v1149_v57 }
  0x39   : > { %796 = vmatpush.bf16.msrb.mxu0 %v1089_v58 }
  0x3a   : > { %1068 = vmatmul.msk.bf16.gmra.mxu0 %vm322_vm0, %v298_v14  ;;  %1076 = vmatmul.msk.bf16.gmra.mxu1 %vm322_vm0, %v298_v14  ;;  %v1108_v14 = vld [vmem:[%s1835_s3 + $0x30] sm:$0xf] }
  0x3b   : > { %v1109_v17 = vor.u32 %v1223_v15, %v1108_v14 }
  0x3c   : > { %1073 = vmatmul.msk.bf16.gmra.mxu2 %vm322_vm0, %v303_v13  ;;  %1081 = vmatmul.msk.bf16.gmra.mxu3 %vm322_vm0, %v303_v13 }
  0x3d   : > { %695 = vmatpush.bf16.msrb.mxu2 %v1109_v17 }
  0x41   : > { %696 = vmatpush.bf16.msrb.mxu2 %v1101_v28 }
  0x45   : > { %697 = vmatpush.bf16.msrb.mxu2 %v1093_v41 }
  0x49   : > { %698 = vmatpush.bf16.msrb.mxu2 %v1085_v53 }
  0x4a   : > { %1069 = vmatmul.msk.bf16.gmra.mxu0 %vm322_vm0, %v299_v61  ;;  %1077 = vmatmul.msk.bf16.gmra.mxu1 %vm322_vm0, %v299_v61  ;;  %v1153_v61 = vor.u32 %v1232_v59, %v1150_v60 }
  0x4c   : > { %845 = vmatpush.bf16.msrb.mxu1 %v1153_v61 }
  0x5a   : > { %1070 = vmatmul.msk.bf16.gmra.mxu0 %vm322_vm0, %v300_v12  ;;  %1078 = vmatmul.msk.bf16.gmra.mxu1 %vm322_vm0, %v300_v12 }
  0x97   : > { %v356_v63 = vpop.f32.mrf.mxu0  ;;  %v405_v0 = vpop.f32.mrf.mxu1 }
  0x98   : > { %v357_v3 = vadd.f32 %v356_v63, %v1689_v1  ;;  %v406_v4 = vadd.f32 %v405_v0, %v1691_v2 }
  0x9a   : > { %v445_v9 = vmax.f32 %v357_v3, 0.0  ;;  %v446_v10 = vmax.f32 %v406_v4, 0.0 }
  0x9f   : > { %v358_v5 = vpop.f32.mrf.mxu0  ;;  %v407_v6 = vpop.f32.mrf.mxu1 }
  0xa0   : > { %v359_v7 = vadd.f32 %v358_v5, %v1689_v1  ;;  %v408_v8 = vadd.f32 %v407_v6, %v1691_v2  ;;  %v381_v57 = vpop.f32.mrf.mxu2  ;;  %v430_v58 = vpop.f32.mrf.mxu3 }
  0xa2   : > { %v447_v11 = vmax.f32 %v359_v7, 0.0  ;;  %v448_v12 = vmax.f32 %v408_v8, 0.0 }
  0xa4   : > { %v477_v13 = vpack.c.bf16 %v447_v11, %v445_v9  ;;  %v478_v14 = vpack.c.bf16 %v448_v12, %v446_v10 }
  0xa6   : > { %699 = vmatmul.bf16.vlgmr.msrb.gmra.mxu2 %v477_v13  ;;  %748 = vmatmul.bf16.vlgmr.msrb.gmra.mxu3 %v478_v14 }
  0xa7   : > { %797 = vmatmul.bf16.vlgmr.msrb.gmra.mxu0 %v477_v13  ;;  %846 = vmatmul.bf16.vlgmr.msrb.gmra.mxu1 %v478_v14  ;;  %v361_v15 = vpop.f32.mrf.mxu0  ;;  %v410_v16 = vpop.f32.mrf.mxu1 }
  0xa8   : > { %v362_v17 = vadd.f32 %v361_v15, %v1689_v1  ;;  %v411_v18 = vadd.f32 %v410_v16, %v1691_v2  ;;  %v383_v5 = vpop.f32.mrf.mxu2  ;;  %v432_v6 = vpop.f32.mrf.mxu3  ;;  %v382_v15 = vadd.f32 %v381_v57, %v1689_v1  ;;  %v431_v16 = vadd.f32 %v430_v58, %v1691_v2 }
  0xaa   : > { %v449_v23 = vmax.f32 %v362_v17, 0.0  ;;  %v450_v24 = vmax.f32 %v411_v18, 0.0  ;;  %v384_v17 = vadd.f32 %v383_v5, %v1689_v1  ;;  %v433_v18 = vadd.f32 %v432_v6, %v1691_v2 }
  0xaf   : > { %v363_v19 = vpop.f32.mrf.mxu0  ;;  %v412_v20 = vpop.f32.mrf.mxu1 }
  0xb0   : > { %v364_v21 = vadd.f32 %v363_v19, %v1689_v1  ;;  %v413_v22 = vadd.f32 %v412_v20, %v1691_v2  ;;  %v386_v13 = vpop.f32.mrf.mxu2  ;;  %v435_v14 = vpop.f32.mrf.mxu3  ;;  %v465_v19 = vmax.f32 %v382_v15, 0.0  ;;  %v466_v20 = vmax.f32 %v431_v16, 0.0 }
  0xb2   : > { %v451_v25 = vmax.f32 %v364_v21, 0.0  ;;  %v452_v26 = vmax.f32 %v413_v22, 0.0  ;;  %v467_v21 = vmax.f32 %v384_v17, 0.0  ;;  %v468_v22 = vmax.f32 %v433_v18, 0.0 }
  0xb4   : > { %v479_v27 = vpack.c.bf16 %v451_v25, %v449_v23  ;;  %v480_v28 = vpack.c.bf16 %v452_v26, %v450_v24  ;;  %v487_v23 = vpack.c.bf16 %v467_v21, %v465_v19  ;;  %v488_v24 = vpack.c.bf16 %v468_v22, %v466_v20 }
  0xb6   : > { %704 = vmatmul.bf16.gmra.mxu2 %v479_v27  ;;  %753 = vmatmul.bf16.gmra.mxu3 %v480_v28 }
  0xb7   : > { %802 = vmatmul.bf16.gmra.mxu0 %v479_v27  ;;  %851 = vmatmul.bf16.gmra.mxu1 %v480_v28  ;;  %v366_v29 = vpop.f32.mrf.mxu0  ;;  %v415_v30 = vpop.f32.mrf.mxu1  ;;  %v387_v27 = vadd.f32 %v386_v13, %v1689_v1  ;;  %v436_v28 = vadd.f32 %v435_v14, %v1691_v2 }
  0xb8   : > { %v367_v31 = vadd.f32 %v366_v29, %v1689_v1  ;;  %v416_v32 = vadd.f32 %v415_v30, %v1691_v2  ;;  %v388_v25 = vpop.f32.mrf.mxu2  ;;  %v437_v26 = vpop.f32.mrf.mxu3 }
  0xb9   : > { %v389_v29 = vadd.f32 %v388_v25, %v1689_v1  ;;  %v438_v30 = vadd.f32 %v437_v26, %v1691_v2 }
  0xba   : > { %v453_v37 = vmax.f32 %v367_v31, 0.0  ;;  %v454_v38 = vmax.f32 %v416_v32, 0.0 }
  0xbf   : > { %v368_v33 = vpop.f32.mrf.mxu0  ;;  %v417_v34 = vpop.f32.mrf.mxu1 }
  0xc0   : > { %v369_v35 = vadd.f32 %v368_v33, %v1689_v1  ;;  %v418_v36 = vadd.f32 %v417_v34, %v1691_v2  ;;  %v391_v31 = vpop.f32.mrf.mxu2  ;;  %v440_v32 = vpop.f32.mrf.mxu3  ;;  %v469_v33 = vmax.f32 %v387_v27, 0.0  ;;  %v470_v34 = vmax.f32 %v436_v28, 0.0 }
  0xc2   : > { %v455_v39 = vmax.f32 %v369_v35, 0.0  ;;  %v456_v40 = vmax.f32 %v418_v36, 0.0  ;;  %v471_v35 = vmax.f32 %v389_v29, 0.0  ;;  %v472_v36 = vmax.f32 %v438_v30, 0.0 }
  0xc4   : > { %v481_v41 = vpack.c.bf16 %v455_v39, %v453_v37  ;;  %v482_v42 = vpack.c.bf16 %v456_v40, %v454_v38  ;;  %v489_v37 = vpack.c.bf16 %v471_v35, %v469_v33  ;;  %v490_v38 = vpack.c.bf16 %v472_v36, %v470_v34 }
  0xc6   : > { %709 = vmatmul.bf16.gmra.mxu2 %v481_v41  ;;  %758 = vmatmul.bf16.gmra.mxu3 %v482_v42 }
  0xc7   : > { %807 = vmatmul.bf16.gmra.mxu0 %v481_v41  ;;  %856 = vmatmul.bf16.gmra.mxu1 %v482_v42  ;;  %v371_v43 = vpop.f32.mrf.mxu0  ;;  %v420_v44 = vpop.f32.mrf.mxu1  ;;  %v392_v41 = vadd.f32 %v391_v31, %v1689_v1  ;;  %v441_v42 = vadd.f32 %v440_v32, %v1691_v2 }
  0xc8   : > { %v372_v45 = vadd.f32 %v371_v43, %v1689_v1  ;;  %v421_v46 = vadd.f32 %v420_v44, %v1691_v2  ;;  %v393_v39 = vpop.f32.mrf.mxu2  ;;  %v442_v40 = vpop.f32.mrf.mxu3 }
  0xc9   : > { %v394_v43 = vadd.f32 %v393_v39, %v1689_v1  ;;  %v443_v44 = vadd.f32 %v442_v40, %v1691_v2 }
  0xca   : > { %v457_v51 = vmax.f32 %v372_v45, 0.0  ;;  %v458_v52 = vmax.f32 %v421_v46, 0.0  ;;  %v473_v45 = vmax.f32 %v392_v41, 0.0  ;;  %v474_v46 = vmax.f32 %v441_v42, 0.0 }
  0xcf   : > { %v373_v47 = vpop.f32.mrf.mxu0  ;;  %v422_v48 = vpop.f32.mrf.mxu1 }
  0xd0   : > { %v374_v49 = vadd.f32 %v373_v47, %v1689_v1  ;;  %v423_v50 = vadd.f32 %v422_v48, %v1691_v2  ;;  %v475_v47 = vmax.f32 %v394_v43, 0.0  ;;  %v476_v48 = vmax.f32 %v443_v44, 0.0 }
  0xd2   : > { %v459_v53 = vmax.f32 %v374_v49, 0.0  ;;  %v460_v54 = vmax.f32 %v423_v50, 0.0  ;;  %v491_v49 = vpack.c.bf16 %v475_v47, %v473_v45  ;;  %v492_v50 = vpack.c.bf16 %v476_v48, %v474_v46 }
  0xd4   : > { %v483_v55 = vpack.c.bf16 %v459_v53, %v457_v51  ;;  %v484_v56 = vpack.c.bf16 %v460_v54, %v458_v52  ;;  %v525_v51 = vld [vmem:[%s1836_s4] sm:$0x3] }
  0xd5   : > { %v1728_v52 = vperm.slane %v525_v51, 1  ;;  %v1731_v54 = vperm.slane %v525_v51, 0 }
  0xd6   : > { %714 = vmatmul.bf16.gmra.mxu2 %v483_v55  ;;  %763 = vmatmul.bf16.gmra.mxu3 %v484_v56 }
  0xd7   : > { %812 = vmatmul.bf16.gmra.mxu0 %v483_v55  ;;  %861 = vmatmul.bf16.gmra.mxu1 %v484_v56  ;;  %v376_v59 = vpop.f32.mrf.mxu0  ;;  %v425_v60 = vpop.f32.mrf.mxu1 }
  0xd8   : > { %v377_v61 = vadd.f32 %v376_v59, %v1689_v1  ;;  %v426_v62 = vadd.f32 %v425_v60, %v1691_v2 }
  0xda   : > { %v461_v7 = vmax.f32 %v377_v61, 0.0  ;;  %v462_v8 = vmax.f32 %v426_v62, 0.0 }
  0xdf   : > { %v378_v63 = vpop.f32.mrf.mxu0  ;;  %v427_v0 = vpop.f32.mrf.mxu1 }
  0xe0   : > { %v379_v3 = vadd.f32 %v378_v63, %v1689_v1  ;;  %v428_v4 = vadd.f32 %v427_v0, %v1691_v2 }
  0xe2   : > { %v463_v9 = vmax.f32 %v379_v3, 0.0  ;;  %v464_v10 = vmax.f32 %v428_v4, 0.0 }
  0xe4   : > { %v485_v11 = vpack.c.bf16 %v463_v9, %v461_v7  ;;  %v486_v12 = vpack.c.bf16 %v464_v10, %v462_v8 }
  0xe6   : > { %719 = vmatmul.bf16.gmra.mxu2 %v485_v11  ;;  %768 = vmatmul.bf16.gmra.mxu3 %v486_v12 }
  0xe7   : > { %817 = vmatmul.bf16.gmra.mxu0 %v485_v11  ;;  %866 = vmatmul.bf16.gmra.mxu1 %v486_v12 }
  0xf6   : > { %724 = vmatmul.bf16.gmra.mxu2 %v487_v23  ;;  %773 = vmatmul.bf16.gmra.mxu3 %v488_v24 }
  0xf7   : > { %822 = vmatmul.bf16.gmra.mxu0 %v487_v23  ;;  %871 = vmatmul.bf16.gmra.mxu1 %v488_v24 }
 0x106   : > { %729 = vmatmul.bf16.gmra.mxu2 %v489_v37  ;;  %778 = vmatmul.bf16.gmra.mxu3 %v490_v38 }
 0x107   : > { %827 = vmatmul.bf16.gmra.mxu0 %v489_v37  ;;  %876 = vmatmul.bf16.gmra.mxu1 %v490_v38 }
 0x116   : > { %734 = vmatmul.bf16.gmra.mxu2 %v491_v49  ;;  %783 = vmatmul.bf16.gmra.mxu3 %v492_v50 }
 0x117   : > { %832 = vmatmul.bf16.gmra.mxu0 %v491_v49  ;;  %881 = vmatmul.bf16.gmra.mxu1 %v492_v50 }
 0x124   : > { %v798_v53 = vpop.f32.mrf.mxu0  ;;  %v847_v1 = vpop.f32.mrf.mxu1 }
 0x125   : > { %v799_v2 = vadd.f32 %v798_v53, %v1728_v52 }
 0x127   : > { %v848_v55 = vadd.f32 %v847_v1, %v799_v2 }
 0x129   : > { %v700_v56 = vpop.f32.mrf.mxu2  ;;  %v749_v57 = vpop.f32.mrf.mxu3  ;;  %v888_v0 = vmax.f32 %v848_v55, 0.0 }
 0x12a   : > { %v701_v58 = vadd.f32 %v700_v56, %v1731_v54 }
 0x12c   : > { %v750_v59 = vadd.f32 %v749_v57, %v701_v58  ;;  %v800_v60 = vpop.f32.mrf.mxu0  ;;  %v849_v61 = vpop.f32.mrf.mxu1 }
 0x12d   : > { %v801_v62 = vadd.f32 %v800_v60, %v1728_v52 }
 0x12e   : > { %v887_v12 = vmax.f32 %v750_v59, 0.0 }
 0x12f   : > { %v850_v63 = vadd.f32 %v849_v61, %v801_v62 }
 0x131   : > { %v890_v3 = vmax.f32 %v850_v63, 0.0  ;;  %v702_v4 = vpop.f32.mrf.mxu2  ;;  %v751_v5 = vpop.f32.mrf.mxu3 }
 0x132   : > { %v703_v6 = vadd.f32 %v702_v4, %v1731_v54 }
 0x133   : > { %v1736_v7 = vpack.c.bf16 %v890_v3, %v888_v0 }
 0x134   : > { %v752_v8 = vadd.f32 %v751_v5, %v703_v6  ;;  %v803_v9 = vpop.f32.mrf.mxu0  ;;  %v852_v10 = vpop.f32.mrf.mxu1 }
 0x135   : > { %v804_v11 = vadd.f32 %v803_v9, %v1728_v52 }
 0x136   : > { %v889_v13 = vmax.f32 %v752_v8, 0.0 }
 0x137   : > { %v853_v14 = vadd.f32 %v852_v10, %v804_v11 }
 0x138   : > { %v1739_v15 = vpack.c.bf16 %v889_v13, %v887_v12 }
 0x139   : > { %v705_v16 = vpop.f32.mrf.mxu2  ;;  %v754_v17 = vpop.f32.mrf.mxu3  ;;  %v892_v24 = vmax.f32 %v853_v14, 0.0 }
 0x13a   : > { %v706_v18 = vadd.f32 %v705_v16, %v1731_v54 }
 0x13c   : > { %v755_v19 = vadd.f32 %v754_v17, %v706_v18  ;;  %v805_v20 = vpop.f32.mrf.mxu0  ;;  %v854_v21 = vpop.f32.mrf.mxu1 }
 0x13d   : > { %v806_v22 = vadd.f32 %v805_v20, %v1728_v52 }
 0x13e   : > { %v891_v34 = vmax.f32 %v755_v19, 0.0 }
 0x13f   : > { %v855_v23 = vadd.f32 %v854_v21, %v806_v22 }
 0x141   : > { %v894_v25 = vmax.f32 %v855_v23, 0.0  ;;  %v707_v26 = vpop.f32.mrf.mxu2  ;;  %v756_v27 = vpop.f32.mrf.mxu3 }
 0x142   : > { %v708_v28 = vadd.f32 %v707_v26, %v1731_v54 }
 0x143   : > { %v1744_v29 = vpack.c.bf16 %v894_v25, %v892_v24 }
 0x144   : > { %v757_v30 = vadd.f32 %v756_v27, %v708_v28  ;;  %v808_v31 = vpop.f32.mrf.mxu0  ;;  %v857_v32 = vpop.f32.mrf.mxu1 }
 0x145   : > { %v809_v33 = vadd.f32 %v808_v31, %v1728_v52 }
 0x146   : > { %v893_v35 = vmax.f32 %v757_v30, 0.0 }
 0x147   : > { %v858_v36 = vadd.f32 %v857_v32, %v809_v33 }
 0x148   : > { %v1747_v37 = vpack.c.bf16 %v893_v35, %v891_v34 }
 0x149   : > { %v710_v38 = vpop.f32.mrf.mxu2  ;;  %v759_v39 = vpop.f32.mrf.mxu3  ;;  %v896_v46 = vmax.f32 %v858_v36, 0.0 }
 0x14a   : > { %v711_v40 = vadd.f32 %v710_v38, %v1731_v54 }
 0x14c   : > { %v760_v41 = vadd.f32 %v759_v39, %v711_v40  ;;  %v810_v42 = vpop.f32.mrf.mxu0  ;;  %v859_v43 = vpop.f32.mrf.mxu1 }
 0x14d   : > { %v811_v44 = vadd.f32 %v810_v42, %v1728_v52 }
 0x14e   : > { %v895_v56 = vmax.f32 %v760_v41, 0.0 }
 0x14f   : > { %v860_v45 = vadd.f32 %v859_v43, %v811_v44 }
 0x151   : > { %v898_v47 = vmax.f32 %v860_v45, 0.0  ;;  %v712_v48 = vpop.f32.mrf.mxu2  ;;  %v761_v49 = vpop.f32.mrf.mxu3 }
 0x152   : > { %v713_v50 = vadd.f32 %v712_v48, %v1731_v54 }
 0x153   : > { %v1752_v51 = vpack.c.bf16 %v898_v47, %v896_v46 }
 0x154   : > { %v762_v53 = vadd.f32 %v761_v49, %v713_v50  ;;  %v813_v1 = vpop.f32.mrf.mxu0  ;;  %v862_v2 = vpop.f32.mrf.mxu1 }
 0x155   : > { %v814_v55 = vadd.f32 %v813_v1, %v1728_v52 }
 0x156   : > { %v897_v57 = vmax.f32 %v762_v53, 0.0 }
 0x157   : > { %v863_v58 = vadd.f32 %v862_v2, %v814_v55 }
 0x158   : > { %v1755_v59 = vpack.c.bf16 %v897_v57, %v895_v56 }
 0x159   : > { %v715_v60 = vpop.f32.mrf.mxu2  ;;  %v764_v61 = vpop.f32.mrf.mxu3  ;;  %v900_v6 = vmax.f32 %v863_v58, 0.0 }
 0x15a   : > { %v716_v62 = vadd.f32 %v715_v60, %v1731_v54 }
 0x15c   : > { %v765_v63 = vadd.f32 %v764_v61, %v716_v62  ;;  %v815_v0 = vpop.f32.mrf.mxu0  ;;  %v864_v3 = vpop.f32.mrf.mxu1 }
 0x15d   : > { %v816_v4 = vadd.f32 %v815_v0, %v1728_v52 }
 0x15e   : > { %v899_v18 = vmax.f32 %v765_v63, 0.0 }
 0x15f   : > { %v865_v5 = vadd.f32 %v864_v3, %v816_v4 }
 0x161   : > { %v902_v8 = vmax.f32 %v865_v5, 0.0  ;;  %v717_v9 = vpop.f32.mrf.mxu2  ;;  %v766_v10 = vpop.f32.mrf.mxu3 }
 0x162   : > { %v718_v11 = vadd.f32 %v717_v9, %v1731_v54 }
 0x163   : > { %v1760_v12 = vpack.c.bf16 %v902_v8, %v900_v6 }
 0x164   : > { %v767_v13 = vadd.f32 %v766_v10, %v718_v11  ;;  %v818_v14 = vpop.f32.mrf.mxu0  ;;  %v867_v16 = vpop.f32.mrf.mxu1 }
 0x165   : > { %v819_v17 = vadd.f32 %v818_v14, %v1728_v52 }
 0x166   : > { %v901_v19 = vmax.f32 %v767_v13, 0.0 }
 0x167   : > { %v868_v20 = vadd.f32 %v867_v16, %v819_v17 }
 0x168   : > { %v1763_v21 = vpack.c.bf16 %v901_v19, %v899_v18 }
 0x169   : > { %v720_v22 = vpop.f32.mrf.mxu2  ;;  %v769_v23 = vpop.f32.mrf.mxu3  ;;  %v904_v31 = vmax.f32 %v868_v20, 0.0 }
 0x16a   : > { %v721_v24 = vadd.f32 %v720_v22, %v1731_v54 }
 0x16c   : > { %v770_v25 = vadd.f32 %v769_v23, %v721_v24  ;;  %v820_v26 = vpop.f32.mrf.mxu0  ;;  %v869_v27 = vpop.f32.mrf.mxu1 }
 0x16d   : > { %v821_v28 = vadd.f32 %v820_v26, %v1728_v52 }
 0x16e   : > { %v903_v41 = vmax.f32 %v770_v25, 0.0 }
 0x16f   : > { %v870_v30 = vadd.f32 %v869_v27, %v821_v28 }
 0x171   : > { %v906_v32 = vmax.f32 %v870_v30, 0.0  ;;  %v722_v33 = vpop.f32.mrf.mxu2  ;;  %v771_v34 = vpop.f32.mrf.mxu3 }
 0x172   : > { %v723_v35 = vadd.f32 %v722_v33, %v1731_v54 }
 0x173   : > { %v1768_v36 = vpack.c.bf16 %v906_v32, %v904_v31 }
 0x174   : > { %v772_v38 = vadd.f32 %v771_v34, %v723_v35  ;;  %v823_v39 = vpop.f32.mrf.mxu0  ;;  %v872_v40 = vpop.f32.mrf.mxu1 }
 0x175   : > { %v824_v34 = vadd.f32 %v823_v39, %v1728_v52 }
 0x176   : > { %v905_v42 = vmax.f32 %v772_v38, 0.0 }
 0x178   : > { %v1770_v43 = vpack.c.bf16 %v905_v42, %v903_v41 }
 0x179   : > { %v725_v44 = vpop.f32.mrf.mxu2  ;;  %v774_v45 = vpop.f32.mrf.mxu3 }
 0x17c   : > { %v825_v46 = vpop.f32.mrf.mxu0  ;;  %v874_v47 = vpop.f32.mrf.mxu1 }
 0x17d   : > { %v826_v30 = vadd.f32 %v825_v46, %v1728_v52 }
 0x17f   : > { %v875_v41 = vadd.f32 %v874_v47, %v826_v30 }
 0x181   : > { %v727_v48 = vpop.f32.mrf.mxu2  ;;  %v776_v49 = vpop.f32.mrf.mxu3 }
 0x184   : > { %v828_v50 = vpop.f32.mrf.mxu0  ;;  %v877_v53 = vpop.f32.mrf.mxu1 }
 0x185   : > { %v829_v11 = vadd.f32 %v828_v50, %v1728_v52  ;;  %v728_v50 = vadd.f32 %v727_v48, %v1731_v54 }
 0x187   : > { %v878_v25 = vadd.f32 %v877_v53, %v829_v11  ;;  %v777_v46 = vadd.f32 %v776_v49, %v728_v50 }
 0x189   : > { %v730_v1 = vpop.f32.mrf.mxu2  ;;  %v779_v2 = vpop.f32.mrf.mxu3  ;;  %v912_v35 = vmax.f32 %v878_v25, 0.0  ;;  %v909_v39 = vmax.f32 %v777_v46, 0.0 }
 0x18a   : > { %v731_v26 = vadd.f32 %v730_v1, %v1731_v54  ;;  %v726_v1 = vadd.f32 %v725_v44, %v1731_v54 }
 0x18c   : > { %v830_v55 = vpop.f32.mrf.mxu0  ;;  %v879_v56 = vpop.f32.mrf.mxu1  ;;  %v780_v38 = vadd.f32 %v779_v2, %v731_v26 }
 0x18d   : > { %v831_v9 = vadd.f32 %v830_v55, %v1728_v52  ;;  %v873_v55 = vadd.f32 %v872_v40, %v824_v34  ;;  %v1355_v40 = vmov 0  }
 0x18e   : > { %1290 = vset.pattern.permute.xlu0 %v1355_v40 }
 0x18f   : > { %v880_v19 = vadd.f32 %v879_v56, %v831_v9  ;;  %v911_v56 = vmax.f32 %v780_v38, 0.0 }
 0x191   : > { %v732_v57 = vpop.f32.mrf.mxu2  ;;  %v781_v58 = vpop.f32.mrf.mxu3  ;;  %v914_v31 = vmax.f32 %v880_v19, 0.0 }
 0x192   : > { %v733_v23 = vadd.f32 %v732_v57, %v1731_v54  ;;  %v910_v57 = vmax.f32 %v875_v41, 0.0 }
 0x193   : > { %v933_v42 = vpack.c.bf16 %v914_v31, %v912_v35 }
 0x194   : > { %v833_v60 = vpop.f32.mrf.mxu0  ;;  %v882_v61 = vpop.f32.mrf.mxu1  ;;  %v782_v32 = vadd.f32 %v781_v58, %v733_v23  ;;  %v908_v58 = vmax.f32 %v873_v55, 0.0 }
 0x195   : > { %v834_v62 = vadd.f32 %v833_v60, %v1728_v52 }
 0x196   : > { %v913_v53 = vmax.f32 %v782_v32, 0.0 }
 0x197   : > { %v883_v4 = vadd.f32 %v882_v61, %v834_v62  ;;  %v775_v61 = vadd.f32 %v774_v45, %v726_v1 }
 0x198   : > { %v932_v60 = vpack.c.bf16 %v913_v53, %v911_v56 }
 0x199   : > { %v735_v63 = vpop.f32.mrf.mxu2  ;;  %v784_v0 = vpop.f32.mrf.mxu3  ;;  %v916_v13 = vmax.f32 %v883_v4, 0.0  ;;  %v907_v2 = vmax.f32 %v775_v61, 0.0 }
 0x19a   : > { %v736_v6 = vadd.f32 %v735_v63, %v1731_v54 }
 0x19b   : > { %v930_v47 = vpack.c.bf16 %v909_v39, %v907_v2 }
 0x19c   : > { %v835_v3 = vpop.f32.mrf.mxu0  ;;  %v884_v8 = vpop.f32.mrf.mxu1  ;;  %v785_v17 = vadd.f32 %v784_v0, %v736_v6 }
 0x19d   : > { %v836_v5 = vadd.f32 %v835_v3, %v1728_v52  ;;  %v931_v52 = vpack.c.bf16 %v910_v57, %v908_v58 }
 0x19e   : > { %v915_v27 = vmax.f32 %v785_v17, 0.0 }
 0x19f   : > { %v885_v10 = vadd.f32 %v884_v8, %v836_v5 }
 0x1a1   : > { %v918_v14 = vmax.f32 %v885_v10, 0.0  ;;  %v737_v16 = vpop.f32.mrf.mxu2  ;;  %v786_v22 = vpop.f32.mrf.mxu3 }
 0x1a2   : > { %v738_v18 = vadd.f32 %v737_v16, %v1731_v54  ;;  %v936_v54 = vld [vmem:[%s1838_s6] sm:$0xff] }
 0x1a3   : > { %v935_v20 = vpack.c.bf16 %v918_v14, %v916_v13  ;;  %939 = vperm.xlu0 %1290, %v936_v54  }
 0x1a4   : > { %v787_v24 = vadd.f32 %v786_v22, %v738_v18 }
 0x1a5   : > { %962 = vmatpush.bf16.xpose.msra.mxu3 %v935_v20 }
 0x1a6   : > { %v917_v28 = vmax.f32 %v787_v24, 0.0 }
 0x1a8   : > { %v934_v33 = vpack.c.bf16 %v917_v28, %v915_v27 }
 0x1aa   : > { %949 = vmatpush.bf16.xpose.msra.mxu2 %v934_v33 }
 0x1ad   : > { %963 = vmatpush.bf16.xpose.msra.mxu3 %v933_v42 }
 0x1b2   : > { %950 = vmatpush.bf16.xpose.msra.mxu2 %v932_v60 }
 0x1b5   : > { %964 = vmatpush.bf16.xpose.msra.mxu3 %v931_v52 }
 0x1ba   : > { %951 = vmatpush.bf16.xpose.msra.mxu2 %v930_v47 }
 0x1bd   : > { %965 = vmatpush.bf16.xpose.msra.mxu3 %v1768_v36 }
 0x1c2   : > { %952 = vmatpush.bf16.xpose.msra.mxu2 %v1770_v43 }
 0x1c5   : > { %966 = vmatpush.bf16.xpose.msra.mxu3 %v1760_v12  ;;  %v919_v12 = vld [vmem:[%s1837_s5] sm:$0xff] }
 0x1c6   : > { %v944_v36 = vunpack.c.h.b16 %v919_v12  ;;  %v943_v43 = vunpack.c.l.b16 %v919_v12 }
 0x1c8   : > { %v945_v44 = vpack.c.b16 %v943_v43, %v943_v43 }
 0x1ca   : > { %953 = vmatpush.bf16.xpose.msra.mxu2 %v1763_v21  ;;  %v946_v21 = vpack.c.b16 %v944_v36, %v944_v36 }
 0x1cd   : > { %967 = vmatpush.bf16.xpose.msra.mxu3 %v1752_v51 }
 0x1d2   : > { %954 = vmatpush.bf16.xpose.msra.mxu2 %v1755_v59 }
 0x1d5   : > { %968 = vmatpush.bf16.xpose.msra.mxu3 %v1744_v29 }
 0x1da   : > { %955 = vmatpush.bf16.xpose.msra.mxu2 %v1747_v37 }
 0x1dd   : > { %969 = vmatpush.bf16.xpose.msra.mxu3 %v1736_v7 }
 0x1e2   : > { %956 = vmatpush.bf16.xpose.msra.mxu2 %v1739_v15 }
 0x1e4   : > { %970 = vmatmul.bf16.vlgmr.msra.gmra.mxu3 %v946_v21 }
 0x1e9   : > { %957 = vmatmul.bf16.vlgmr.msra.gmra.mxu2 %v945_v44 }
 0x215   : > { %v940_v51 = vpop.permute.xlu0 %939 }
 0x267   : > { %v971_v29 = vpop.f32.mrf.mxu3 }
 0x26c   : > { %v958_v37 = vpop.f32.mrf.mxu2 }
 0x26d   : > { %v959_v7 = vadd.f32 %v958_v37, %v940_v51 }
 0x26f   : > { %v972_v59 = vadd.f32 %v971_v29, %v959_v7  ;;  %v973_v15 = vpop.f32.mrf.mxu3 }
 0x271   : > { %975 = vst [vmem:[%s272_s18] sm:$0xff] %v972_v59 }
 0x272   : > { %1318 = shalt.err (!%p1315_p3)
}
 0x273   : > { %1250 = dma.vmem_to_hbm [thread:$0]  (%p1434_p5), %s990_s19, 128, %s992_s20, %s977_s21  }
 0x274   : > { %v960_v45 = vpop.f32.mrf.mxu2 }
 0x275 PF: > { %p1256_p4 = scmp.ge.s32.totalorder %s1353_s27, 2  ;;  %s1003_s13 = sand.u32 1, %s1341_s24  }
 0x276   : > { %s1004_s8 = scalar_lea.sflag [#allocation3], %s1003_s13 }
 0x277   : > { %p1253_p7 = pnand %p1256_p4, %p1438_p6 }
 0x279   : > { %p1254_p8 = pneg %p1253_p7 }
 0x27b   : > { %1336 = dma.done.wait (%p1254_p8), %s1004_s8, 128  }
 0x27c   : > { %1338 = vsyncadd (%p1254_p8), %s1004_s8, 4294967168  ;;  %p17_p9 = scmp.ge.s32.totalorder %s1421_s30, 4   ;;  %s1842_s24 = smov %s1345_s25 }
 0x27d   : > { %s1843_s25 = smov %s1349_s26  ;;  %s1844_s26 = smov %s1432_s10 }
 0x27e   : > { %s1845_s27 = smov %s1421_s30  ;;  %19 = sbr.rel (!%p17_p9) target bundleno = 3 (0x3), region = 83 }
 0x283   :  { %1010 = vsyncpa [#allocation3], 1 }
 0x284   :  { %1012 = vsyncpa [#allocation3 + $0x1], 1 }

</bundles_post_ra>
